<compile_context>
chip_gen: v7x
topology: tpu7x:2x2x1
jax: 0.10.0
libtpu: 0.0.40
codegen_flags: <defaults>
</compile_context>

<pallas_src>
import jax
import jax.numpy as jnp
from jax.experimental import pallas as pl
from jax.experimental.pallas import tpu as pltpu


def _hbm_copy_kernel(x_hbm_ref, o_hbm_ref, copy_sem):
    # One HBM -> HBM DMA for the whole array: no VMEM staging, no grid steps.
    cp = pltpu.make_async_copy(x_hbm_ref, o_hbm_ref, copy_sem)
    cp.start()
    cp.wait()


def _identity_copy(x):
    """Single-descriptor HBM->HBM identity copy via pallas_call."""
    return pl.pallas_call(
        _hbm_copy_kernel,
        out_shape=jax.ShapeDtypeStruct(x.shape, x.dtype),
        in_specs=[pl.BlockSpec(memory_space=pl.ANY)],   # raw HBM ref, no auto-DMA
        out_specs=pl.BlockSpec(memory_space=pl.ANY),    # raw HBM ref, no auto-DMA
        scratch_shapes=[pltpu.SemaphoreType.DMA],
        compiler_params=pltpu.CompilerParams(
            # Kernel uses no VMEM blocks; explicit limit just documents headroom
            # for v5e/v6e/v7x scoped-VMEM defaults.
            vmem_limit_bytes=32 * 1024 * 1024,
        ),
    )(x)


def print_shape(x, msg="", run_copy_kernel=False):
    """Pallas equivalent of PrintShape.forward: print shape, return x unchanged.

    Default (run_copy_kernel=False) is the optimal zero-copy path: shapes are
    static in JAX, so under jit this prints once at trace time and returns x
    with zero HBM traffic.  With run_copy_kernel=True a single HBM->HBM DMA
    identity kernel is executed instead (used here to exercise pallas_call).
    """
    print(f"{msg} Shape: {tuple(x.shape)}")

    if not run_copy_kernel or x.size == 0:
        return x

    orig_shape = x.shape
    # 0-d arrays: give the DMA a 2-D view; all other ranks are copied as-is.
    xk = x.reshape(1, 1) if x.ndim == 0 else x
    out = _identity_copy(xk)
    return out.reshape(orig_shape)


class PrintShape:
    """Thin stateless wrapper mirroring the nn.Module API (no parameters)."""

    def __init__(self, msg="", run_copy_kernel=False):
        self.msg = msg
        self.run_copy_kernel = run_copy_kernel

    def __call__(self, x):
        return print_shape(x, self.msg, run_copy_kernel=self.run_copy_kernel)


if __name__ == "__main__":
    key = jax.random.PRNGKey(0)
    # Small NCHW-style input consistent with a conv-net intermediate.
    x = jax.random.normal(key, (2, 4, 16, 16), dtype=jnp.float32)

    # Zero-copy default path (the semantically optimal implementation).
    y_fast = PrintShape(msg="[unet1d/fast]")(x)
    assert y_fast is x or bool(jnp.all(y_fast == x))

    # Pallas HBM->HBM DMA path (run the kernel once).
    mod = PrintShape(msg="[unet1d]", run_copy_kernel=True)
    y = mod(x)
    y = jax.block_until_ready(y)

    # Identity semantics check: output must equal input exactly.
    assert y.shape == x.shape and y.dtype == x.dtype
    assert bool(jnp.all(y == x))

    print("KERNEL_OK")
</pallas_src>

<mosaic_0001>
module attributes {stable_mosaic.version = 11 : i64} {
  func.func @_hbm_copy_kernel(%arg0: memref<2x4x16x16xf32, #tpu.memory_space<any>>, %arg1: memref<2x4x16x16xf32, #tpu.memory_space<any>>, %arg2: memref<!tpu.dma_semaphore, #tpu.memory_space<semaphore_mem>>) attributes {dimension_semantics = [], scalar_prefetch = 0 : i64, scratch_operands = 1 : i64, tpu.core_type = #tpu.core_type<tc>} {
    tpu.enqueue_dma source(%arg0 : memref<2x4x16x16xf32, #tpu.memory_space<any>>) target(%arg1 : memref<2x4x16x16xf32, #tpu.memory_space<any>>) target_semaphore(%arg2 : memref<!tpu.dma_semaphore, #tpu.memory_space<semaphore_mem>>)
    tpu.wait_dma2 semaphore(%arg2 : memref<!tpu.dma_semaphore, #tpu.memory_space<semaphore_mem>>) src(%arg0 : memref<2x4x16x16xf32, #tpu.memory_space<any>>) dst(%arg1 : memref<2x4x16x16xf32, #tpu.memory_space<any>>)
    return
  }
}

</mosaic_0001>

<bundles_post_ra>
// kernel: tpu_custom_call.1
= control target key start
LH: loop header
LB: loop body
LE: loop exit
PB: predicated region body
PF: predicated region fallthrough
CT: control target
= control target key end

     0   :  { %s36_s6 = smov [#allocation2]   ;;  %s37_s7 = smov [#allocation3]   ;;  %s55_s0 = inlined_call_operand.hbm [shape: f32[2,4,16,16], index: 0, kind: input, shape index: {}]   ;;  %s56_s1 = inlined_call_operand.hbm [shape: f32[2,4,16,16], index: 1, kind: output, shape index: {}]  }
   0x1   :  { %s38_s8 = smov 0  }
   0x2   :  { %18 = dma.general %s55_s0, 2048, %s56_s1, %s36_s6, %s37_s7, [#allocation4], %s38_s8, 0  }
   0x3   :  { %34 = dma.done.wait [#allocation2], 2048 }
   0x4   :  { %35 = vsyncadd [#allocation2], 4294965248 }
   0x5   :  { %24 = vsyncmov [#allocation2] }
   0x8   :  { %s25_s13 = vpop.sfrf %24 }
   0x9   :  { %p30_p0 = scmp.ne.s32.totalorder %s25_s13, 0 }
   0xb   :  { %29 = shalt.err (%p30_p0)  }

</bundles_post_ra>
